<compile_context>
chip_gen: v5e
topology: v5e:2x2
jax: 0.10.0
libtpu: 0.0.40
codegen_flags: <defaults>
</compile_context>

<pallas_src>
import functools

import numpy as np
import jax
import jax.numpy as jnp
from jax.experimental import pallas as pl
from jax.experimental.pallas import tpu as pltpu


_LANE = 128      # TPU lane width: channels are padded to a multiple of this
_SUBLANE = 8     # sublane granularity: padded image width is a multiple of this


def _round_up(x, m):
    return (x + m - 1) // m * m


@functools.lru_cache(maxsize=None)
def _roll_sign():
    """Detect pltpu.roll's shift convention with a tiny probe kernel.

    Returns +1 if pltpu.roll matches np.roll (result[i] = src[i - shift]),
    -1 for the opposite convention. Defensive: keeps the conv index math
    correct regardless of the roll convention of the installed JAX version.
    """
    x = np.arange(8 * _LANE, dtype=np.float32).reshape(8, _LANE)

    def probe(x_ref, o_ref):
        o_ref[...] = pltpu.roll(x_ref[...], shift=1, axis=0)

    out = np.asarray(
        pl.pallas_call(probe,
                       out_shape=jax.ShapeDtypeStruct((8, _LANE), jnp.float32))(x))
    if np.array_equal(out, np.roll(x, 1, axis=0)):
        return 1
    if np.array_equal(out, np.roll(x, -1, axis=0)):
        return -1
    raise RuntimeError("unexpected pltpu.roll semantics")


def _residual_block_kernel(x_ref, mask_ref, w1_ref, b1_ref, w2_ref, b2_ref,
                           o_ref, *, H, W, Wp, C, roll_sign):
    """One batch element per grid step. All tensors NHWC, C lane-padded.

    x_ref   : (1, H+2, Wp, C) f32  zero-padded input (halo row/col at index 0,
                                   extra zero columns on the right so Wp % 8 == 0)
    mask_ref: (H*Wp, 1)      f32   1.0 where (flat index % Wp) < W, else 0.0
    w1_ref  : (3, 3*C, C)          conv1 weights * bn1 scale, rows = (kw, cin)
    b1_ref  : (1, 1, C)      f32   bn1 shift
    w2_ref  : (3, 3*C, C)          conv2 weights * bn2 scale
    b2_ref  : (1, 1, C)      f32   bn2 shift
    o_ref   : (1, H, W, C)   f32
    """
    nrows = H * Wp
    cdt = w1_ref.dtype

    def shift_rows(flat, s):
        # flat: (nrows, C)  ->  t with t[r] = flat[(r + s) % nrows]
        if s % nrows == 0:
            return flat
        return pltpu.roll(flat, shift=(-roll_sign * s) % nrows, axis=0)

    def conv3x3(rows_of, w_ref, col_base):
        # rows_of(kh) -> (H, Wp, C) f32 rows kh..kh+H of the padded frame.
        # acc[h*Wp + w] = sum_{kh,kw} rows_of(kh)[h, w + kw - col_base] @ w[kh, kw]
        # The kw shift is a circular sublane roll of the flattened rows; wrapped
        # entries only ever land in columns >= W, which are zero (mask) or
        # discarded by the final [:W] slice.
        acc = jnp.zeros((nrows, C), jnp.float32)
        for kh in range(3):
            flat = rows_of(kh).reshape(nrows, C)
            parts = [shift_rows(flat, kw - col_base).astype(cdt)
                     for kw in range(3)]
            patch = jnp.concatenate(parts, axis=-1)          # (nrows, 3*C)
            acc = acc + jnp.dot(patch, w_ref[kh],
                                preferred_element_type=jnp.float32)
        return acc

    x = x_ref[0]                                             # (H+2, Wp, C) f32

    # ---- conv1 (bn1 scale folded into weights) + shift + relu; zero the
    #      out-of-image columns so they act as conv2's left/right halo. ----
    acc1 = conv3x3(lambda kh: x[kh:kh + H], w1_ref, col_base=0)
    t1 = jnp.maximum(acc1 + b1_ref[0], 0.0) * mask_ref[...]  # (nrows, C) f32

    # ---- conv2: one zero row on top/bottom provides the vertical halo; the
    #      horizontal halo comes for free from the masked columns via the
    #      circular shift. ----
    zrow = jnp.zeros((1, Wp, C), jnp.float32)
    t1pad = jnp.concatenate([zrow, t1.reshape(H, Wp, C), zrow], axis=0)
    acc2 = conv3x3(lambda kh: t1pad[kh:kh + H], w2_ref, col_base=1)

    # ---- bn2 shift + identity residual (exact f32) + relu ----
    res = shift_rows(x[1:H + 1].reshape(nrows, C), 1)        # res[h*Wp+w] = x[h, w]
    out = jnp.maximum(acc2 + b2_ref[0] + res, 0.0)
    out = out.reshape(H, Wp, C)[:, :W, :]
    o_ref[...] = out.reshape(1, H, W, C)


def residual_block_forward(x_nchw, w1, gamma1, beta1, mean1, var1,
                           w2, gamma2, beta2, mean2, var2,
                           eps=1e-5, compute_dtype=jnp.bfloat16):
    """x_nchw: (N, C, H, W) float32. Conv weights in PyTorch OIHW layout."""
    N, Cin, H, W = x_nchw.shape
    Cout = w1.shape[0]
    assert Cin == Cout, "identity residual requires in_channels == out_channels"

    C = Cin
    Cp = _round_up(C, _LANE)           # lane-dense channel padding
    Wp = _round_up(W + 2, _SUBLANE)    # conv halo + sublane alignment
    roll_sign = _roll_sign()

    # Fold eval-mode BatchNorm into per-channel scale/shift; fold the scale
    # directly into the conv weights so the kernel only adds a shift.
    scale1 = gamma1 / jnp.sqrt(var1 + eps)
    shift1 = beta1 - mean1 * scale1
    scale2 = gamma2 / jnp.sqrt(var2 + eps)
    shift2 = beta2 - mean2 * scale2

    def prep_weights(w_oihw, scale):
        w = jnp.transpose(w_oihw, (2, 3, 1, 0)).astype(jnp.float32)   # HWIO
        w = w * scale[None, None, None, :]                            # BN fold
        w = jnp.pad(w, ((0, 0), (0, 0), (0, Cp - C), (0, Cp - C)))
        # rows ordered (kw, cin) to match the kernel's kw-concatenated patch
        return w.reshape(3, 3 * Cp, Cp).astype(compute_dtype)

    def prep_shift(s):
        return jnp.pad(s.astype(jnp.float32), (0, Cp - C)).reshape(1, 1, Cp)

    w1p, w2p = prep_weights(w1, scale1), prep_weights(w2, scale2)
    b1p, b2p = prep_shift(shift1), prep_shift(shift2)

    # NCHW -> NHWC; zero-pad: 1 halo row/col top/left, 1 halo row bottom, and
    # enough right columns to make the width a sublane multiple; pad channels.
    x_nhwc = jnp.transpose(x_nchw, (0, 2, 3, 1)).astype(jnp.float32)
    x_pad = jnp.pad(x_nhwc, ((0, 0), (1, 1), (1, Wp - W - 1), (0, Cp - C)))

    # valid-column mask for the conv1 intermediate (flattened (H, Wp) rows)
    col = jnp.arange(Wp, dtype=jnp.int32)
    mask = jnp.broadcast_to((col < W).astype(jnp.float32)[None, :], (H, Wp))
    mask = mask.reshape(H * Wp, 1)

    kernel = functools.partial(_residual_block_kernel,
                               H=H, W=W, Wp=Wp, C=Cp, roll_sign=roll_sign)

    out_nhwc = pl.pallas_call(
        kernel,
        out_shape=jax.ShapeDtypeStruct((N, H, W, Cp), jnp.float32),
        grid_spec=pltpu.PrefetchScalarGridSpec(
            num_scalar_prefetch=0,
            grid=(N,),
            in_specs=[
                pl.BlockSpec((1, H + 2, Wp, Cp), lambda b: (b, 0, 0, 0)),
                pl.BlockSpec((H * Wp, 1), lambda b: (0, 0)),
                pl.BlockSpec((3, 3 * Cp, Cp), lambda b: (0, 0, 0)),
                pl.BlockSpec((1, 1, Cp), lambda b: (0, 0, 0)),
                pl.BlockSpec((3, 3 * Cp, Cp), lambda b: (0, 0, 0)),
                pl.BlockSpec((1, 1, Cp), lambda b: (0, 0, 0)),
            ],
            out_specs=pl.BlockSpec((1, H, W, Cp), lambda b: (b, 0, 0, 0)),
        ),
        compiler_params=pltpu.CompilerParams(
            dimension_semantics=("parallel",)),
    )(x_pad, mask, w1p, b1p, w2p, b2p)

    # drop the padded channels, back to NCHW
    return jnp.transpose(out_nhwc[..., :C], (0, 3, 1, 2))


def _reference_forward(x_nchw, w1, gamma1, beta1, mean1, var1,
                       w2, gamma2, beta2, mean2, var2,
                       eps=1e-5, compute_dtype=jnp.bfloat16):
    """Pure-JAX reference (lax conv), mirroring the kernel's quantization points
    (BN scale folded into weights, conv operands in compute_dtype, f32 accum)."""
    def conv3x3(x, w):  # x NCHW f32, w OIHW f32 (scale already folded)
        return jax.lax.conv_general_dilated(
            x.astype(compute_dtype), w.astype(compute_dtype),
            window_strides=(1, 1), padding=((1, 1), (1, 1)),
            dimension_numbers=("NCHW", "OIHW", "NCHW"),
            preferred_element_type=jnp.float32)

    scale1 = gamma1 / jnp.sqrt(var1 + eps)
    shift1 = beta1 - mean1 * scale1
    scale2 = gamma2 / jnp.sqrt(var2 + eps)
    shift2 = beta2 - mean2 * scale2

    out = conv3x3(x_nchw, w1 * scale1[:, None, None, None])
    out = jnp.maximum(out + shift1.reshape(1, -1, 1, 1), 0.0)
    out = conv3x3(out, w2 * scale2[:, None, None, None])
    out = out + shift2.reshape(1, -1, 1, 1)
    return jnp.maximum(out + x_nchw, 0.0)


if __name__ == "__main__":
    N, C, H, W = 2, 4, 16, 16     # in_channels == out_channels, stride=1

    key = jax.random.PRNGKey(0)
    keys = jax.random.split(key, 8)
    x = jax.random.normal(keys[0], (N, C, H, W), jnp.float32)

    # conv weights, PyTorch OIHW layout
    w1 = 0.1 * jax.random.normal(keys[1], (C, C, 3, 3), jnp.float32)
    w2 = 0.1 * jax.random.normal(keys[2], (C, C, 3, 3), jnp.float32)

    # BatchNorm parameters / running stats (eval-mode semantics)
    gamma1 = 1.0 + 0.1 * jax.random.normal(keys[3], (C,), jnp.float32)
    beta1 = 0.1 * jax.random.normal(keys[4], (C,), jnp.float32)
    mean1 = 0.05 * jax.random.normal(keys[5], (C,), jnp.float32)
    var1 = 1.0 + 0.1 * jax.random.uniform(keys[6], (C,), jnp.float32)
    gamma2 = jnp.linspace(0.9, 1.1, C, dtype=jnp.float32)
    beta2 = jnp.linspace(-0.05, 0.05, C, dtype=jnp.float32)
    mean2 = jnp.linspace(-0.02, 0.02, C, dtype=jnp.float32)
    var2 = jnp.linspace(1.0, 1.2, C, dtype=jnp.float32)

    out = residual_block_forward(x, w1, gamma1, beta1, mean1, var1,
                                 w2, gamma2, beta2, mean2, var2)
    out = jax.block_until_ready(out)

    ref = _reference_forward(x, w1, gamma1, beta1, mean1, var1,
                             w2, gamma2, beta2, mean2, var2)
    assert out.shape == (N, C, H, W)
    err = jnp.max(jnp.abs(out - ref))
    # bf16 conv operands (mirrored in the reference) -> slightly relaxed tol
    assert jnp.allclose(out, ref, atol=5e-3, rtol=5e-3), f"max abs diff {err}"

    print("KERNEL_OK")
</pallas_src>

<mosaic_0001>
module attributes {stable_mosaic.version = 11 : i64} {
  func.func @probe(%arg0: memref<8x128xf32, #tpu.memory_space<vmem>>, %arg1: memref<8x128xf32, #tpu.memory_space<vmem>>) attributes {dimension_semantics = [], scalar_prefetch = 0 : i64, scratch_operands = 0 : i64, tpu.core_type = #tpu.core_type<tc>} {
    %c0 = arith.constant 0 : index
    %c0_0 = arith.constant 0 : index
    %0 = vector.load %arg0[%c0, %c0_0] : memref<8x128xf32, #tpu.memory_space<vmem>>, vector<8x128xf32>
    %c1_i32 = arith.constant 1 : i32
    %1 = tpu.dynamic_rotate %0 by %c1_i32 dim 0 : vector<8x128xf32>, i32 -> vector<8x128xf32>
    %c0_1 = arith.constant 0 : index
    %c0_2 = arith.constant 0 : index
    %2 = vector.load %arg1[%c0_1, %c0_2] : memref<8x128xf32, #tpu.memory_space<vmem>>, vector<8x128xf32>
    tpu.vector_store %arg1[%c0_1, %c0_2], %1 {strides = array<i32>} : memref<8x128xf32, #tpu.memory_space<vmem>>, vector<8x128xf32>,
    return
  }
}

</mosaic_0001>

<bundles_post_ra>
// kernel: tpu_custom_call.1
= control target key start
LH: loop header
LB: loop body
LE: loop exit
PB: predicated region body
PF: predicated region fallthrough
CT: control target
= control target key end

     0   :  { %6 = vsyncpa [#allocation3], 0  ;;  %s115_s0 = inlined_call_operand.hbm [shape: f32[8,128], index: 0, kind: input, shape index: {}]   ;;  %s116_s1 = inlined_call_operand.hbm [shape: f32[8,128], index: 1, kind: output, shape index: {}]  }
   0x1   :  { %7 = vsyncpa [#allocation4], 0  ;;  %s13_s8 = sshll.u32 %s115_s0, 4  ;;  %s97_s9 = smov [#allocation2]   ;;  %s14_s8 = int_to_ptr.hbm [resolvable:$true] %s13_s8 }
   0x2   :  { %s15_s10 = sshll.u32 %s97_s9, 4  ;;  %s16_s10 = int_to_ptr.vmem [resolvable:$true] %s15_s10 }
   0x3   :  { %18 = dma.hbm_to_vmem [thread:$0]  %s14_s8, 128, %s16_s10, [#allocation3]  }
   0x4   :  { %93 = dma.done.wait [#allocation3], 128  }
   0x5   :  { %94 = vsyncadd [#allocation3], 4294967168  ;;  %s98_s11 = smov [#allocation5]   ;;  %s33_s15 = sshll.u32 %s116_s1, 4  ;;  %v23_v0 = vld [vmem:[#allocation2] sm:$0xff]  ;;  %s34_s15 = int_to_ptr.hbm [resolvable:$true] %s33_s15 }
   0x6   :  { %s31_s12 = sshll.u32 %s98_s11, 4  ;;  %v24_v1 = vrot.slane %v23_v0, 7  ;;  %s32_s12 = int_to_ptr.vmem [resolvable:$true] %s31_s12 }
   0x8   :  { %25 = vst [vmem:[#allocation5] sm:$0xff] %v24_v1 }
   0x9   :  { %36 = dma.vmem_to_hbm [thread:$0]  %s32_s12, 128, %s34_s15, [#allocation4]  }
   0xa   :  { %95 = dma.done.wait [#allocation4], 128  }
   0xb   :  { %96 = vsyncadd [#allocation4], 4294967168 }
   0xc   :  { %41 = vsyncpa [#allocation3], 1 }
   0xd   :  { %42 = vsyncpa [#allocation4], 1 }

</bundles_post_ra>
